<compile_context>
chip_gen: v7x
topology: tpu7x:2x2x1
jax: 0.10.0
libtpu: 0.0.40
codegen_flags: <defaults>
</compile_context>

<pallas_src>
import math

import jax
import jax.numpy as jnp
from jax.experimental import pallas as pl
from jax.experimental.pallas import tpu as pltpu

_LANE = 128
_MIB = 1024 * 1024


def _round_up(x, m):
    return ((x + m - 1) // m) * m


def _round_down(x, m):
    return (x // m) * m


def _vmem_budget_bytes(frac=0.60):
    """Generation-aware VMEM budget: ~60% of physical (v7x 64 MiB -> ~38 MiB,
    v5e/v6e 128 MiB -> ~77 MiB).  Falls back to the smallest (v7x) capacity."""
    try:
        phys = int(pltpu.get_tpu_info().vmem_capacity_bytes)
    except Exception:  # info query unavailable -> conservative v7x assumption
        phys = 64 * _MIB
    return int(phys * frac)


def _make_kernel(compute_dtype):
    def kernel(x_ref, w_ref, o_ref):
        x = x_ref[...]
        if compute_dtype is not None and x.dtype != compute_dtype:
            # Cast inside the kernel: no extra HBM pass (unlike a wrapper astype).
            x = x.astype(compute_dtype)
        o_ref[...] = jnp.dot(
            x, w_ref[...], preferred_element_type=jnp.float32
        ).astype(o_ref.dtype)

    return kernel


def prepare_so2_weight(weight, *, compute_dtype=None, lane_pad=True):
    """Fold the +-m complex combine into a single [2K, 2*H_pad] matrix.

    weight: [out_features, num_channels] (nn.Linear layout); rows [:H] = Wr,
    rows [H:] = Wi.  Call ONCE at parameter-prep time, not per forward.

    If lane_pad, H is zero-padded to a multiple of 64 so the output slab width
    2*H_pad is a multiple of 128 (unmasked lane-dense stores).  If
    compute_dtype is given (e.g. jnp.bfloat16), the weight is cast once here.

    Returns (w_combined [2K, 2*H_pad], H, H_pad).
    """
    out_features, _k = weight.shape
    assert out_features % 2 == 0
    h = out_features // 2
    h_pad = _round_up(h, 64) if lane_pad else h
    wr_t = jnp.transpose(weight[:h, :])            # [K, H]
    wi_t = jnp.transpose(weight[h:, :])            # [K, H]
    if h_pad != h:
        pad = ((0, 0), (0, h_pad - h))
        wr_t = jnp.pad(wr_t, pad)
        wi_t = jnp.pad(wi_t, pad)
    top = jnp.concatenate([wr_t, wi_t], axis=1)    # rows hit by x[:, 0]
    bot = jnp.concatenate([-wi_t, wr_t], axis=1)   # rows hit by x[:, 1]
    w_c = jnp.concatenate([top, bot], axis=0)      # [2K, 2*H_pad]
    if compute_dtype is not None:
        w_c = w_c.astype(compute_dtype)
    return w_c, h, h_pad


def so2_m_convolution(x, weight=None, *, w_combined=None, h=None, h_pad=None,
                      compute_dtype=None, tile_n=None, tile_n_cap=2048,
                      vmem_budget_bytes=None):
    """Pallas forward of SO2_m_Convolution.

    Args:
      x:           [N, 2, num_channels] activations (dtype preserved for output).
      weight:      [out_features, num_channels] (nn.Linear layout); used only if
                   `w_combined` is not supplied (folded per call — prefer
                   prepare_so2_weight once at parameter-prep time).
      w_combined / h / h_pad: pre-folded weight from prepare_so2_weight.
      compute_dtype: e.g. jnp.bfloat16.  The activation cast happens inside the
                   kernel; the weight must already be in this dtype (done by
                   prepare_so2_weight).  Accumulation stays f32.
      tile_n:      optional row-tile override (must match dtype sublane packing);
                   by default derived from the VMEM budget.
    Returns:
      [N, 2, out_features // 2]
    """
    n, two, k = x.shape
    assert two == 2
    if w_combined is None:
        assert weight is not None
        w_combined, h, h_pad = prepare_so2_weight(weight, compute_dtype=compute_dtype)
    else:
        assert h is not None and h_pad is not None
    k2, h2 = w_combined.shape
    assert k2 == 2 * k and h2 == 2 * h_pad

    out_dtype = x.dtype
    x2 = x.reshape(n, k2)                      # free contiguous reshape, NO dtype cast

    in_itemsize = jnp.dtype(x2.dtype).itemsize
    out_itemsize = jnp.dtype(out_dtype).itemsize
    w_itemsize = jnp.dtype(w_combined.dtype).itemsize
    w_bytes = k2 * h2 * w_itemsize             # weight is single-buffered / resident

    if vmem_budget_bytes is None:
        vmem_budget_bytes = _vmem_budget_bytes()

    if tile_n is None:
        # Memory-bound kernel: pick the biggest row tile the VMEM budget allows
        # (double-buffered x / out tiles + resident weight + compiler headroom).
        per_row = 2 * (k2 * in_itemsize + h2 * out_itemsize)
        avail = vmem_budget_bytes - w_bytes - 2 * _MIB
        tile_n = _round_down(max(avail // per_row, _LANE), _LANE)
        tile_n = max(min(tile_n, tile_n_cap), _LANE)
    else:
        # dtype-aware sublane packing: f32 -> 8, bf16 -> 16, int8/fp8 -> 32.
        pack = max(32 // min(in_itemsize, out_itemsize), 8)
        assert tile_n % pack == 0, f"tile_n must be a multiple of {pack}"

    if n <= tile_n:
        if n > 1024:
            # Ensure >=2 grid steps so ("parallel",) can split rows across
            # v7x's two TensorCores (no-op on single-TC v5e/v6e).
            tile_n = _round_up(pl.cdiv(n, 2), _LANE)
        else:
            tile_n = n                          # single full-array block
    grid = (pl.cdiv(n, tile_n),)

    vmem_need = (w_bytes
                 + 2 * tile_n * k2 * in_itemsize
                 + 2 * tile_n * h2 * out_itemsize)
    vmem_limit = int(min(
        max(min(2 * vmem_need, vmem_budget_bytes), vmem_need + 2 * _MIB, 16 * _MIB),
        128 * _MIB))

    cost = pl.CostEstimate(
        flops=2 * n * k2 * h2,
        transcendentals=0,
        bytes_accessed=(n * k2 * in_itemsize
                        + k2 * h2 * w_itemsize
                        + n * h2 * out_itemsize),
    )

    def _run(single_buffered_weight):
        if single_buffered_weight:
            # Constant index_map: a second pipeline buffer is pure VMEM waste.
            w_spec = pl.BlockSpec((k2, h2), lambda i: (0, 0),
                                  pipeline_mode=pl.Buffered(1))
        else:
            w_spec = pl.BlockSpec((k2, h2), lambda i: (0, 0))
        return pl.pallas_call(
            _make_kernel(compute_dtype),
            grid=grid,
            in_specs=[
                pl.BlockSpec((tile_n, k2), lambda i: (i, 0)),   # pipelined x rows
                w_spec,                                         # VMEM-resident W_c
            ],
            out_specs=pl.BlockSpec((tile_n, h2), lambda i: (i, 0)),
            out_shape=jax.ShapeDtypeStruct((n, h2), out_dtype),
            compiler_params=pltpu.CompilerParams(
                dimension_semantics=("parallel",),              # megacore on v7x
                vmem_limit_bytes=vmem_limit,
            ),
            cost_estimate=cost,
        )(x2, w_combined)

    try:
        out2 = _run(True)
    except Exception:
        # pipeline_mode=pl.Buffered unsupported on this jax version ->
        # fall back to the default (double-buffered) weight spec.
        out2 = _run(False)

    out = out2.reshape(n, 2, h_pad)             # free, contiguous reshape
    if h_pad != h:
        out = out[..., :h]                      # drop zero-padded lanes
    return out


def init_so2_weight(key, m, sphere_channels, m_output_channels, lmax, mmax):
    """Deterministic init matching nn.Linear default + the 1/sqrt(2) scale."""
    assert mmax >= m
    num_coefficients = lmax - m + 1
    num_channels = num_coefficients * sphere_channels
    out_features = 2 * m_output_channels * (num_channels // sphere_channels)
    bound = 1.0 / math.sqrt(num_channels)
    w = jax.random.uniform(
        key, (out_features, num_channels), jnp.float32, minval=-bound, maxval=bound
    )
    return w * (1.0 / math.sqrt(2.0)), num_channels, out_features


def _reference(x, weight):
    """Pure-JAX mirror of the PyTorch forward."""
    y = jnp.einsum("nmc,oc->nmo", x, weight)
    h = weight.shape[0] // 2
    x_r, x_i = y[..., :h], y[..., h:]
    out_r = x_r[:, 0:1, :] - x_i[:, 1:2, :]
    out_i = x_r[:, 1:2, :] + x_i[:, 0:1, :]
    return jnp.concatenate([out_r, out_i], axis=1)


if __name__ == "__main__":
    key = jax.random.PRNGKey(0)
    k_w, k_xa, k_xb, k_w2, k_xc = jax.random.split(key, 5)

    # ---- m = 1 block: 2H = 128 (already lane-dense, no padding) -------------
    sphere_channels, m_output_channels, lmax, mmax = 16, 16, 4, 2
    weight, num_channels, out_features = init_so2_weight(
        k_w, 1, sphere_channels, m_output_channels, lmax, mmax
    )
    H = out_features // 2

    # Case 1: tiny batch (single full-array block), f32, derived tile.
    n_a = 8
    x_a = jax.random.normal(k_xa, (n_a, 2, num_channels), dtype=jnp.float32)
    out_a = jax.block_until_ready(so2_m_convolution(x_a, weight))
    ref_a = _reference(x_a, weight)
    assert out_a.shape == (n_a, 2, H)
    assert jnp.allclose(out_a, ref_a, atol=1e-5, rtol=1e-5)

    # Case 2: larger ragged batch exercising the multi-step pipelined path with
    # a pre-folded weight and an explicit row-tile override.
    n_b = 300
    x_b = jax.random.normal(k_xb, (n_b, 2, num_channels), dtype=jnp.float32)
    w_c, h_real, h_padded = prepare_so2_weight(weight)
    out_b = jax.block_until_ready(
        so2_m_convolution(x_b, w_combined=w_c, h=h_real, h_pad=h_padded, tile_n=128)
    )
    ref_b = _reference(x_b, weight)
    assert out_b.shape == (n_b, 2, H)
    assert jnp.allclose(out_b, ref_b, atol=1e-5, rtol=1e-5)

    # Case 3: bf16 compute path (weight cast once at prep, activation cast
    # in-kernel, f32 accumulation).  Looser tolerance vs the f32 reference.
    w_c_bf16, h_real, h_padded = prepare_so2_weight(weight, compute_dtype=jnp.bfloat16)
    out_c = jax.block_until_ready(
        so2_m_convolution(x_b, w_combined=w_c_bf16, h=h_real, h_pad=h_padded,
                          compute_dtype=jnp.bfloat16)
    )
    assert out_c.shape == (n_b, 2, H)
    assert jnp.allclose(out_c, ref_b, atol=3e-2, rtol=3e-2)

    # Case 4: m = 2 block where 2H = 96 < 128 -> exercises the lane-padding
    # path (pad to 128 inside the kernel, slice back after the reshape).
    weight2, num_channels2, out_features2 = init_so2_weight(
        k_w2, 2, sphere_channels, m_output_channels, lmax, mmax
    )
    H2 = out_features2 // 2
    n_c = 40
    x_c = jax.random.normal(k_xc, (n_c, 2, num_channels2), dtype=jnp.float32)
    out_d = jax.block_until_ready(so2_m_convolution(x_c, weight2))
    ref_d = _reference(x_c, weight2)
    assert out_d.shape == (n_c, 2, H2)
    assert jnp.allclose(out_d, ref_d, atol=1e-5, rtol=1e-5)

    print("KERNEL_OK")
</pallas_src>

<mosaic_0001>
module attributes {stable_mosaic.version = 11 : i64} {
  func.func @kernel(%arg0: i32, %arg1: memref<8x128xf32, #tpu.memory_space<vmem>>, %arg2: memref<128x128xf32, #tpu.memory_space<vmem>>, %arg3: memref<8x128xf32, #tpu.memory_space<vmem>>) attributes {dimension_semantics = [#tpu.dimension_semantics<parallel>], iteration_bounds = array<i64: 1>, scalar_prefetch = 0 : i64, scratch_operands = 0 : i64, tpu.core_type = #tpu.core_type<tc>, window_params = [{transform_indices = @transform_0, window_bounds = array<i64: 8, 128>}, {pipeline_mode = #tpu.pipeline_mode<synchronous>, transform_indices = @transform_1, window_bounds = array<i64: 128, 128>}, {transform_indices = @transform_2, window_bounds = array<i64: 8, 128>}]} {
    %c0 = arith.constant 0 : index
    %c0_0 = arith.constant 0 : index
    %0 = vector.load %arg1[%c0, %c0_0] : memref<8x128xf32, #tpu.memory_space<vmem>>, vector<8x128xf32>
    %c0_1 = arith.constant 0 : index
    %c0_2 = arith.constant 0 : index
    %1 = vector.load %arg2[%c0_1, %c0_2] : memref<128x128xf32, #tpu.memory_space<vmem>>, vector<128x128xf32>
    %cst = arith.constant dense<0.000000e+00> : vector<8x128xf32>
    %2 = tpu.matmul %0, %1, %cst {dimension_numbers = #tpu.dot_dimension_numbers<[1], [0], [0], [1], [0, 0, 1, 1], [], []>} : vector<8x128xf32>, vector<128x128xf32>, vector<8x128xf32> -> vector<8x128xf32>
    %c0_3 = arith.constant 0 : index
    %c0_4 = arith.constant 0 : index
    %3 = vector.load %arg3[%c0_3, %c0_4] : memref<8x128xf32, #tpu.memory_space<vmem>>, vector<8x128xf32>
    tpu.vector_store %arg3[%c0_3, %c0_4], %2 {strides = array<i32>} : memref<8x128xf32, #tpu.memory_space<vmem>>, vector<8x128xf32>,
    return
  }
  func.func @transform_0(%arg0: i32) -> (i32, i32) {
    %c0_i32 = arith.constant 0 : i32
    %c0_i32_0 = arith.constant 0 : i32
    return %arg0, %c0_i32 : i32, i32
  }
  func.func @transform_1(%arg0: i32) -> (i32, i32) {
    %c0_i32 = arith.constant 0 : i32
    %c0_i32_0 = arith.constant 0 : i32
    %c0_i32_1 = arith.constant 0 : i32
    return %c0_i32, %c0_i32_0 : i32, i32
  }
  func.func @transform_2(%arg0: i32) -> (i32, i32) {
    %c0_i32 = arith.constant 0 : i32
    %c0_i32_0 = arith.constant 0 : i32
    return %arg0, %c0_i32 : i32, i32
  }
}

module attributes {stable_mosaic.version = 11 : i64} {
  func.func @kernel(%arg0: i32, %arg1: memref<8x128xf32, #tpu.memory_space<vmem>>, %arg2: memref<128x128xf32, #tpu.memory_space<vmem>>, %arg3: memref<8x128xf32, #tpu.memory_space<vmem>>) attributes {dimension_semantics = [#tpu.dimension_semantics<parallel>], iteration_bounds = array<i64: 1>, scalar_prefetch = 0 : i64, scratch_operands = 0 : i64, tpu.core_type = #tpu.core_type<tc>, window_params = [{transform_indices = @transform_0, window_bounds = array<i64: 8, 128>}, {pipeline_mode = #tpu.pipeline_mode<synchronous>, transform_indices = @transform_1, window_bounds = array<i64: 128, 128>}, {transform_indices = @transform_2, window_bounds = array<i64: 8, 128>}]} {
    %c0 = arith.constant 0 : index
    %c0_0 = arith.constant 0 : index
    %0 = vector.load %arg1[%c0, %c0_0] : memref<8x128xf32, #tpu.memory_space<vmem>>, vector<8x128xf32>
    %c0_1 = arith.constant 0 : index
    %c0_2 = arith.constant 0 : index
    %1 = vector.load %arg2[%c0_1, %c0_2] : memref<128x128xf32, #tpu.memory_space<vmem>>, vector<128x128xf32>
    %cst = arith.constant dense<0.000000e+00> : vector<8x128xf32>
    %2 = tpu.matmul %0, %1, %cst {dimension_numbers = #tpu.dot_dimension_numbers<[1], [0], [0], [1], [0, 0, 1, 1], [], []>} : vector<8x128xf32>, vector<128x128xf32>, vector<8x128xf32> -> vector<8x128xf32>
    %c0_3 = arith.constant 0 : index
    %c0_4 = arith.constant 0 : index
    %3 = vector.load %arg3[%c0_3, %c0_4] : memref<8x128xf32, #tpu.memory_space<vmem>>, vector<8x128xf32>
    tpu.vector_store %arg3[%c0_3, %c0_4], %2 {strides = array<i32>} : memref<8x128xf32, #tpu.memory_space<vmem>>, vector<8x128xf32>,
    return
  }
  func.func @transform_0(%arg0: i32) -> (i32, i32) {
    %c0_i32 = arith.constant 0 : i32
    %c0_i32_0 = arith.constant 0 : i32
    return %arg0, %c0_i32 : i32, i32
  }
  func.func @transform_1(%arg0: i32) -> (i32, i32) {
    %c0_i32 = arith.constant 0 : i32
    %c0_i32_0 = arith.constant 0 : i32
    %c0_i32_1 = arith.constant 0 : i32
    return %c0_i32, %c0_i32_0 : i32, i32
  }
  func.func @transform_2(%arg0: i32) -> (i32, i32) {
    %c0_i32 = arith.constant 0 : i32
    %c0_i32_0 = arith.constant 0 : i32
    return %arg0, %c0_i32 : i32, i32
  }
}

</mosaic_0001>

<bundles_post_ra>
// kernel: tpu_custom_call.1
= control target key start
LH: loop header
LB: loop body
LE: loop exit
PB: predicated region body
PF: predicated region fallthrough
CT: control target
= control target key end

     0   :  { %7 = vsyncpa [#allocation3], 0  ;;  %s364_s0 = inlined_call_operand.hbm [shape: f32[8,128], index: 0, kind: input, shape index: {}]   ;;  %s365_s1 = inlined_call_operand.hbm [shape: f32[128,128], index: 1, kind: input, shape index: {}]   ;;  %s366_s2 = inlined_call_operand.hbm [shape: f32[8,128], index: 2, kind: output, shape index: {}]  }
   0x1   :  { %8 = vsyncpa [#allocation6], 0 }
   0x2   :  { %9 = vsyncpa [#allocation4], 0  ;;  %s298_s9 = smov [#allocation2]   ;;  %s299_s11 = smov [#allocation5]  }
   0x3   :  { %s16_s10 = sshll.u32 %s298_s9, 4  ;;  %s25_s12 = sshll.u32 %s299_s11, 4  ;;  %s17_s10 = int_to_ptr.vmem [resolvable:$true] %s16_s10  ;;  %s321_s12 = int_to_ptr.vmem [resolvable:$true] %s25_s12 }
   0x4   :  { %s226_s15 = scalar_lea.hbm %s364_s0, 128 }
   0x5   :  { %p227_p0 = scmp.ne.s32.totalorder %s364_s0, %s226_s15  ;;  %p230_p1 = scmp.lt.u32.totalorder %s226_s15, %s364_s0 }
   0x7   :  { %p232_p2 = pnand %p230_p1, %p227_p0 }
   0x9   :  { %235 = shalt.err (!%p232_p2)
}
   0xa   :  { %s236_s20 = scalar_lea.vmem %s17_s10, 128  ;;  %p241_p4 = scmp.lt.s32.totalorder %s17_s10, %s17_s10 }
   0xb   :  { %p237_p3 = scmp.ne.s32.totalorder %s17_s10, %s236_s20  ;;  %p242_p5 = scmp.lt.s32.totalorder %s236_s20, %s236_s20 }
   0xd   :  { %p243_p6 = por %p242_p5, %p241_p4 }
   0xf   :  { %p244_p7 = pnand %p243_p6, %p237_p3 }
  0x11   :  { %247 = shalt.err (!%p244_p7)
}
  0x12   :  { %19 = dma.hbm_to_vmem [thread:$0]  %s364_s0, 128, %s17_s10, [#allocation3]  }
  0x13   :  { %s248_s25 = scalar_lea.hbm %s365_s1, 2048 }
  0x14   :  { %p249_p8 = scmp.ne.s32.totalorder %s365_s1, %s248_s25  ;;  %p252_p9 = scmp.lt.u32.totalorder %s248_s25, %s365_s1 }
  0x16   :  { %p254_p10 = pnand %p252_p9, %p249_p8 }
  0x18   :  { %257 = shalt.err (!%p254_p10)
}
  0x19   :  { %s258_s30 = scalar_lea.vmem %s321_s12, 2048  ;;  %p263_p12 = scmp.lt.s32.totalorder %s321_s12, %s321_s12 }
  0x1a   :  { %p259_p11 = scmp.ne.s32.totalorder %s321_s12, %s258_s30  ;;  %p264_p13 = scmp.lt.s32.totalorder %s258_s30, %s258_s30 }
  0x1c   :  { %p265_p0 = por %p264_p13, %p263_p12 }
  0x1e   :  { %p266_p1 = pnand %p265_p0, %p259_p11 }
  0x20   :  { %269 = shalt.err (!%p266_p1)
}
  0x21   :  { %s300_s0 = smov 128   ;;  %s301_s3 = smov 8  }
  0x22   :  { %31 = dma.hbm_to_vmem [thread:$0]  %s365_s1, 2048, %s321_s12, [#allocation6], %s300_s0, %s300_s0, %s301_s3  }
  0x23   :  { %292 = dma.done.wait [#allocation3], 128  }
  0x24   :  { %293 = vsyncadd [#allocation3], 4294967168 }
  0x25   :  { %294 = dma.done.wait [#allocation6], 2048  }
  0x26   :  { %295 = vsyncadd [#allocation6], 4294965248  ;;  %v302_v0 = vmov 0.0|0.0   ;;  %vm303_vm0 = vmmov 0   ;;  %v304_v1 = vmov 0.0   ;;  %v39_v2 = vld [vmem:[#allocation5] sm:$0xff] }
  0x27   :  { %194 = vmatprep.subr.bf16.mxu0 %v302_v0  ;;  %191 = vmatprep.mubr.msk.f32.mxu0 %vm303_vm0, %v304_v1  ;;  %v40_v3 = vld [vmem:[#allocation5 + $0x8] sm:$0xff]  ;;  %v41_v4 = vld [vmem:[#allocation5 + $0x10] sm:$0xff]  ;;  %v42_v6 = vld [vmem:[#allocation5 + $0x18] sm:$0xff]  ;;  %s305_s1 = smov [#allocation7]  }
  0x28   :  { %v195_v5 = vpack.c.bf16 %v40_v3, %v39_v2  ;;  %v198_v7 = vpack.c.bf16 %v42_v6, %v41_v4  ;;  %v43_v8 = vld [vmem:[#allocation5 + $0x20] sm:$0xff]  ;;  %v44_v9 = vld [vmem:[#allocation5 + $0x28] sm:$0xff]  ;;  %v45_v11 = vld [vmem:[#allocation5 + $0x30] sm:$0xff]  ;;  %s132_s6 = sshll.u32 %s305_s1, 4  ;;  %s133_s6 = int_to_ptr.vmem [resolvable:$true] %s132_s6 }
  0x29   :  { %v201_v10 = vpack.c.bf16 %v44_v9, %v43_v8  ;;  %v46_v12 = vld [vmem:[#allocation5 + $0x38] sm:$0xff]  ;;  %v47_v14 = vld [vmem:[#allocation5 + $0x40] sm:$0xff]  ;;  %v48_v15 = vld [vmem:[#allocation5 + $0x48] sm:$0xff]  ;;  %s270_s7 = scalar_lea.vmem %s133_s6, 128  ;;  %p275_p3 = scmp.lt.s32.totalorder %s133_s6, %s133_s6 }
  0x2a   :  { %196 = vmatpush3.bf16.msra.mxu0 %v195_v5  ;;  %v204_v13 = vpack.c.bf16 %v46_v12, %v45_v11  ;;  %v207_v16 = vpack.c.bf16 %v48_v15, %v47_v14  ;;  %v49_v17 = vld [vmem:[#allocation5 + $0x50] sm:$0xff]  ;;  %v50_v18 = vld [vmem:[#allocation5 + $0x58] sm:$0xff]  ;;  %v51_v20 = vld [vmem:[#allocation5 + $0x60] sm:$0xff]  ;;  %p271_p2 = scmp.ne.s32.totalorder %s133_s6, %s270_s7  ;;  %p276_p4 = scmp.lt.s32.totalorder %s270_s7, %s270_s7 }
  0x2b   :  { %197 = vmatprep.subr.bf16.mxu0 %v302_v0  ;;  %v210_v19 = vpack.c.bf16 %v50_v18, %v49_v17  ;;  %v52_v21 = vld [vmem:[#allocation5 + $0x68] sm:$0xff]  ;;  %v53_v23 = vld [vmem:[#allocation5 + $0x70] sm:$0xff]  ;;  %v54_v24 = vld [vmem:[#allocation5 + $0x78] sm:$0xff] }
  0x2c   :  { %v213_v22 = vpack.c.bf16 %v52_v21, %v51_v20  ;;  %v216_v25 = vpack.c.bf16 %v54_v24, %v53_v23  ;;  %v38_v26 = vld [vmem:[#allocation2] sm:$0xff]  ;;  %p277_p5 = por %p276_p4, %p275_p3 }
  0x2e   :  { %199 = vmatpush3.bf16.msra.mxu0 %v198_v7  ;;  %p278_p6 = pnand %p277_p5, %p271_p2 }
  0x2f   :  { %200 = vmatprep.subr.bf16.mxu0 %v302_v0 }
  0x32   :  { %202 = vmatpush3.bf16.msra.mxu0 %v201_v10 }
  0x33   :  { %203 = vmatprep.subr.bf16.mxu0 %v302_v0 }
  0x36   :  { %205 = vmatpush3.bf16.msra.mxu0 %v204_v13 }
  0x37   :  { %206 = vmatprep.subr.bf16.mxu0 %v302_v0 }
  0x3a   :  { %208 = vmatpush3.bf16.msra.mxu0 %v207_v16 }
  0x3b   :  { %209 = vmatprep.subr.bf16.mxu0 %v302_v0 }
  0x3e   :  { %211 = vmatpush3.bf16.msra.mxu0 %v210_v19 }
  0x3f   :  { %212 = vmatprep.subr.bf16.mxu0 %v302_v0 }
  0x42   :  { %214 = vmatpush3.bf16.msra.mxu0 %v213_v22 }
  0x43   :  { %215 = vmatprep.subr.bf16.mxu0 %v302_v0 }
  0x46   :  { %217 = vmatpush3.bf16.msra.mxu0 %v216_v25 }
  0x49   :  { %192 = vmatmul.mubr.f32.vlgmr.msra.gmra.mrb[0].mxu0 %v38_v26 }
 0x11c   :  { %v121_v27 = vpop.f32.mrb[0].mxu0 }
 0x11d   :  { %125 = vst [vmem:[#allocation7] sm:$0xff] %v121_v27  ;;  %v193_v28 = vpop.f32.mrb[1].mxu0 }
 0x11e   :  { %281 = shalt.err (!%p278_p6)
}
 0x11f   :  { %s282_s10 = scalar_lea.hbm %s366_s2, 128 }
 0x120   :  { %p283_p7 = scmp.ne.s32.totalorder %s366_s2, %s282_s10  ;;  %p286_p8 = scmp.lt.u32.totalorder %s282_s10, %s366_s2 }
 0x122   :  { %p288_p9 = pnand %p286_p8, %p283_p7 }
 0x124   :  { %291 = shalt.err (!%p288_p9)
}
 0x125   :  { %135 = dma.vmem_to_hbm [thread:$0]  %s133_s6, 128, %s366_s2, [#allocation4]  }
 0x126   :  { %296 = dma.done.wait [#allocation4], 128  }
 0x127   :  { %297 = vsyncadd [#allocation4], 4294967168 }
 0x128   :  { %139 = vsyncpa [#allocation3], 1 }
 0x129   :  { %140 = vsyncpa [#allocation6], 1 }
 0x12a   :  { %141 = vsyncpa [#allocation4], 1 }

// kernel: tpu_custom_call.1
= control target key start
LH: loop header
LB: loop body
LE: loop exit
PB: predicated region body
PF: predicated region fallthrough
CT: control target
= control target key end

     0   :  { %7 = vsyncpa [#allocation3], 0  ;;  %s364_s0 = inlined_call_operand.hbm [shape: f32[8,128], index: 0, kind: input, shape index: {}]   ;;  %s365_s1 = inlined_call_operand.hbm [shape: f32[128,128], index: 1, kind: input, shape index: {}]   ;;  %s366_s2 = inlined_call_operand.hbm [shape: f32[8,128], index: 2, kind: output, shape index: {}]  }
   0x1   :  { %8 = vsyncpa [#allocation6], 0 }
   0x2   :  { %9 = vsyncpa [#allocation4], 0  ;;  %s298_s9 = smov [#allocation2]   ;;  %s299_s11 = smov [#allocation5]  }
   0x3   :  { %s16_s10 = sshll.u32 %s298_s9, 4  ;;  %s25_s12 = sshll.u32 %s299_s11, 4  ;;  %s17_s10 = int_to_ptr.vmem [resolvable:$true] %s16_s10  ;;  %s321_s12 = int_to_ptr.vmem [resolvable:$true] %s25_s12 }
   0x4   :  { %s226_s15 = scalar_lea.hbm %s364_s0, 128 }
   0x5   :  { %p227_p0 = scmp.ne.s32.totalorder %s364_s0, %s226_s15  ;;  %p230_p1 = scmp.lt.u32.totalorder %s226_s15, %s364_s0 }
   0x7   :  { %p232_p2 = pnand %p230_p1, %p227_p0 }
   0x9   :  { %235 = shalt.err (!%p232_p2)
}
   0xa   :  { %s236_s20 = scalar_lea.vmem %s17_s10, 128  ;;  %p241_p4 = scmp.lt.s32.totalorder %s17_s10, %s17_s10 }
   0xb   :  { %p237_p3 = scmp.ne.s32.totalorder %s17_s10, %s236_s20  ;;  %p242_p5 = scmp.lt.s32.totalorder %s236_s20, %s236_s20 }
   0xd   :  { %p243_p6 = por %p242_p5, %p241_p4 }
   0xf   :  { %p244_p7 = pnand %p243_p6, %p237_p3 }
  0x11   :  { %247 = shalt.err (!%p244_p7)
}
  0x12   :  { %19 = dma.hbm_to_vmem [thread:$0]  %s364_s0, 128, %s17_s10, [#allocation3]  }
  0x13   :  { %s248_s25 = scalar_lea.hbm %s365_s1, 2048 }
  0x14   :  { %p249_p8 = scmp.ne.s32.totalorder %s365_s1, %s248_s25  ;;  %p252_p9 = scmp.lt.u32.totalorder %s248_s25, %s365_s1 }
  0x16   :  { %p254_p10 = pnand %p252_p9, %p249_p8 }
  0x18   :  { %257 = shalt.err (!%p254_p10)
}
  0x19   :  { %s258_s30 = scalar_lea.vmem %s321_s12, 2048  ;;  %p263_p12 = scmp.lt.s32.totalorder %s321_s12, %s321_s12 }
  0x1a   :  { %p259_p11 = scmp.ne.s32.totalorder %s321_s12, %s258_s30  ;;  %p264_p13 = scmp.lt.s32.totalorder %s258_s30, %s258_s30 }
  0x1c   :  { %p265_p0 = por %p264_p13, %p263_p12 }
  0x1e   :  { %p266_p1 = pnand %p265_p0, %p259_p11 }
  0x20   :  { %269 = shalt.err (!%p266_p1)
}
  0x21   :  { %s300_s0 = smov 128   ;;  %s301_s3 = smov 8  }
  0x22   :  { %31 = dma.hbm_to_vmem [thread:$0]  %s365_s1, 2048, %s321_s12, [#allocation6], %s300_s0, %s300_s0, %s301_s3  }
  0x23   :  { %292 = dma.done.wait [#allocation3], 128  }
  0x24   :  { %293 = vsyncadd [#allocation3], 4294967168 }
  0x25   :  { %294 = dma.done.wait [#allocation6], 2048  }
  0x26   :  { %295 = vsyncadd [#allocation6], 4294965248  ;;  %v302_v0 = vmov 0.0|0.0   ;;  %vm303_vm0 = vmmov 0   ;;  %v304_v1 = vmov 0.0   ;;  %v39_v2 = vld [vmem:[#allocation5] sm:$0xff] }
  0x27   :  { %194 = vmatprep.subr.bf16.mxu0 %v302_v0  ;;  %191 = vmatprep.mubr.msk.f32.mxu0 %vm303_vm0, %v304_v1  ;;  %v40_v3 = vld [vmem:[#allocation5 + $0x8] sm:$0xff]  ;;  %v41_v4 = vld [vmem:[#allocation5 + $0x10] sm:$0xff]  ;;  %v42_v6 = vld [vmem:[#allocation5 + $0x18] sm:$0xff]  ;;  %s305_s1 = smov [#allocation7]  }
  0x28   :  { %v195_v5 = vpack.c.bf16 %v40_v3, %v39_v2  ;;  %v198_v7 = vpack.c.bf16 %v42_v6, %v41_v4  ;;  %v43_v8 = vld [vmem:[#allocation5 + $0x20] sm:$0xff]  ;;  %v44_v9 = vld [vmem:[#allocation5 + $0x28] sm:$0xff]  ;;  %v45_v11 = vld [vmem:[#allocation5 + $0x30] sm:$0xff]  ;;  %s132_s6 = sshll.u32 %s305_s1, 4  ;;  %s133_s6 = int_to_ptr.vmem [resolvable:$true] %s132_s6 }
  0x29   :  { %v201_v10 = vpack.c.bf16 %v44_v9, %v43_v8  ;;  %v46_v12 = vld [vmem:[#allocation5 + $0x38] sm:$0xff]  ;;  %v47_v14 = vld [vmem:[#allocation5 + $0x40] sm:$0xff]  ;;  %v48_v15 = vld [vmem:[#allocation5 + $0x48] sm:$0xff]  ;;  %s270_s7 = scalar_lea.vmem %s133_s6, 128  ;;  %p275_p3 = scmp.lt.s32.totalorder %s133_s6, %s133_s6 }
  0x2a   :  { %196 = vmatpush3.bf16.msra.mxu0 %v195_v5  ;;  %v204_v13 = vpack.c.bf16 %v46_v12, %v45_v11  ;;  %v207_v16 = vpack.c.bf16 %v48_v15, %v47_v14  ;;  %v49_v17 = vld [vmem:[#allocation5 + $0x50] sm:$0xff]  ;;  %v50_v18 = vld [vmem:[#allocation5 + $0x58] sm:$0xff]  ;;  %v51_v20 = vld [vmem:[#allocation5 + $0x60] sm:$0xff]  ;;  %p271_p2 = scmp.ne.s32.totalorder %s133_s6, %s270_s7  ;;  %p276_p4 = scmp.lt.s32.totalorder %s270_s7, %s270_s7 }
  0x2b   :  { %197 = vmatprep.subr.bf16.mxu0 %v302_v0  ;;  %v210_v19 = vpack.c.bf16 %v50_v18, %v49_v17  ;;  %v52_v21 = vld [vmem:[#allocation5 + $0x68] sm:$0xff]  ;;  %v53_v23 = vld [vmem:[#allocation5 + $0x70] sm:$0xff]  ;;  %v54_v24 = vld [vmem:[#allocation5 + $0x78] sm:$0xff] }
  0x2c   :  { %v213_v22 = vpack.c.bf16 %v52_v21, %v51_v20  ;;  %v216_v25 = vpack.c.bf16 %v54_v24, %v53_v23  ;;  %v38_v26 = vld [vmem:[#allocation2] sm:$0xff]  ;;  %p277_p5 = por %p276_p4, %p275_p3 }
  0x2e   :  { %199 = vmatpush3.bf16.msra.mxu0 %v198_v7  ;;  %p278_p6 = pnand %p277_p5, %p271_p2 }
  0x2f   :  { %200 = vmatprep.subr.bf16.mxu0 %v302_v0 }
  0x32   :  { %202 = vmatpush3.bf16.msra.mxu0 %v201_v10 }
  0x33   :  { %203 = vmatprep.subr.bf16.mxu0 %v302_v0 }
  0x36   :  { %205 = vmatpush3.bf16.msra.mxu0 %v204_v13 }
  0x37   :  { %206 = vmatprep.subr.bf16.mxu0 %v302_v0 }
  0x3a   :  { %208 = vmatpush3.bf16.msra.mxu0 %v207_v16 }
  0x3b   :  { %209 = vmatprep.subr.bf16.mxu0 %v302_v0 }
  0x3e   :  { %211 = vmatpush3.bf16.msra.mxu0 %v210_v19 }
  0x3f   :  { %212 = vmatprep.subr.bf16.mxu0 %v302_v0 }
  0x42   :  { %214 = vmatpush3.bf16.msra.mxu0 %v213_v22 }
  0x43   :  { %215 = vmatprep.subr.bf16.mxu0 %v302_v0 }
  0x46   :  { %217 = vmatpush3.bf16.msra.mxu0 %v216_v25 }
  0x49   :  { %192 = vmatmul.mubr.f32.vlgmr.msra.gmra.mrb[0].mxu0 %v38_v26 }
 0x11c   :  { %v121_v27 = vpop.f32.mrb[0].mxu0 }
 0x11d   :  { %125 = vst [vmem:[#allocation7] sm:$0xff] %v121_v27  ;;  %v193_v28 = vpop.f32.mrb[1].mxu0 }
 0x11e   :  { %281 = shalt.err (!%p278_p6)
}
 0x11f   :  { %s282_s10 = scalar_lea.hbm %s366_s2, 128 }
 0x120   :  { %p283_p7 = scmp.ne.s32.totalorder %s366_s2, %s282_s10  ;;  %p286_p8 = scmp.lt.u32.totalorder %s282_s10, %s366_s2 }
 0x122   :  { %p288_p9 = pnand %p286_p8, %p283_p7 }
 0x124   :  { %291 = shalt.err (!%p288_p9)
}
 0x125   :  { %135 = dma.vmem_to_hbm [thread:$0]  %s133_s6, 128, %s366_s2, [#allocation4]  }
 0x126   :  { %296 = dma.done.wait [#allocation4], 128  }
 0x127   :  { %297 = vsyncadd [#allocation4], 4294967168 }
 0x128   :  { %139 = vsyncpa [#allocation3], 1 }
 0x129   :  { %140 = vsyncpa [#allocation6], 1 }
 0x12a   :  { %141 = vsyncpa [#allocation4], 1 }

</bundles_post_ra>
